<compile_context>
chip_gen: v5e
topology: v5e:2x2
jax: 0.10.0
libtpu: 0.0.40
codegen_flags: <defaults>
</compile_context>

<pallas_src>
import functools

import jax
import jax.numpy as jnp
from jax import lax
from jax.experimental import pallas as pl
from jax.experimental.pallas import tpu as pltpu

LN_EPS = 1e-5


def _round_up(x, m):
    return ((x + m - 1) // m) * m


def _vmem_budget_bytes():
    """Generation-aware VMEM budget for tile sizing (with headroom)."""
    try:
        phys = int(pltpu.get_tpu_info().vmem_capacity_bytes)
    except Exception:
        phys = 64 * 1024 * 1024  # conservative (v7x per-core physical VMEM)
    # Use at most half of physical, never more than 32 MiB scoped, minus headroom.
    return max(8 * 1024 * 1024, min(phys // 2, 32 * 1024 * 1024) - 4 * 1024 * 1024)


# --------------------- fused LayerNorm + Linear kernel -----------------------
def _prenorm_linear_kernel(x_ref, w_ref, b_ref, o_ref, y_ref):
    # Grid = (row tiles [parallel], output-column tiles [arbitrary]).
    # Compute the normalized row tile once per row tile, reuse across columns.
    @pl.when(pl.program_id(1) == 0)
    def _():
        x = x_ref[...].astype(jnp.float32)                       # (bm, dim)
        mean = jnp.mean(x, axis=-1, keepdims=True)
        centered = x - mean
        var = jnp.mean(centered * centered, axis=-1, keepdims=True)
        y = centered * lax.rsqrt(var + LN_EPS)                   # affine folded into W/b
        y_ref[...] = y.astype(y_ref.dtype)                       # MXU feed dtype (bf16)

    acc = jnp.dot(y_ref[...], w_ref[...],
                  preferred_element_type=jnp.float32)            # (bm, bn), f32 acc
    o_ref[...] = (acc + b_ref[...].astype(jnp.float32)).astype(o_ref.dtype)


def prenorm_linear(x, gamma, beta, w, b, *, block_rows=1024, block_cols=512,
                   out_dtype=None, vmem_budget_bytes=None):
    """Fused PreNorm with fn = Linear: Linear(LayerNorm(x)).

    x: (batch, seq, dim); gamma/beta: (dim,); w: (dim, dim_out); b: (dim_out,).
    """
    batch, seq, dim = x.shape
    assert w.shape[0] == dim, (w.shape, dim)
    dim_out = w.shape[1]
    rows = batch * seq
    x2d = x.reshape(rows, dim)
    out_dtype = x.dtype if out_dtype is None else out_dtype

    if vmem_budget_bytes is None:
        vmem_budget_bytes = _vmem_budget_bytes()

    # ---- Fold the LayerNorm affine into the (constant) weights: exact math.
    #      W' = diag(gamma) @ W ;  b' = beta @ W + b
    gamma_f32 = gamma.astype(jnp.float32)
    beta_f32 = beta.astype(jnp.float32)
    w_f32 = w.astype(jnp.float32)
    w_eff = (gamma_f32[:, None] * w_f32).astype(w.dtype)
    b_eff = beta_f32 @ w_f32 + b.astype(jnp.float32)             # f32 (added to f32 acc)

    act_bytes = jnp.dtype(x.dtype).itemsize
    out_bytes = jnp.dtype(out_dtype).itemsize
    w_bytes = jnp.dtype(w.dtype).itemsize

    # ---- Output-column (N) tile: lane-dense multiple of 128, small enough that
    #      the double-buffered weight block stays a modest slice of the budget.
    bn = min(_round_up(dim_out, 128), _round_up(block_cols, 128))
    while bn > 128 and 2 * dim * bn * w_bytes > vmem_budget_bytes // 4:
        bn = max(128, ((bn // 2) // 128) * 128)
    dim_out_p = _round_up(dim_out, bn)
    n_col_tiles = dim_out_p // bn

    # ---- Row tile sizing against an honest VMEM footprint.
    def _footprint(bm_):
        return (2 * bm_ * dim * act_bytes        # x tile, double-buffered
                + 2 * bm_ * bn * out_bytes       # out tile, double-buffered
                + bm_ * dim * w_bytes            # normalized-y VMEM scratch
                + 2 * dim * bn * w_bytes         # W block, double-buffered
                + 2 * bn * 4                     # bias block, double-buffered
                + 3 * bm_ * dim * 4)             # f32 LN temporaries headroom

    bm = min(_round_up(rows, 8), _round_up(block_rows, 8))
    if rows > 8:
        # Keep >= 2 row-grid steps: lets megacore split rows and the pipeline overlap.
        bm = min(bm, max(8, _round_up(pl.cdiv(rows, 2), 8)))
    while bm > 8 and _footprint(bm) > vmem_budget_bytes:
        bm //= 2
    bm = max(8, _round_up(bm, 8))

    # ---- Pad rows / output columns so the grid divides evenly. Padded rows are
    #      all-zero -> LN gives 0 -> output is b' (finite); sliced off below.
    rows_p = _round_up(rows, bm)
    if rows_p != rows:
        x2d = jnp.pad(x2d, ((0, rows_p - rows), (0, 0)))
    if dim_out_p != dim_out:
        w_eff = jnp.pad(w_eff, ((0, 0), (0, dim_out_p - dim_out)))
        b_eff = jnp.pad(b_eff, ((0, dim_out_p - dim_out),))
    b2d = b_eff.reshape(1, dim_out_p)

    n_row_tiles = rows_p // bm

    out2d = pl.pallas_call(
        _prenorm_linear_kernel,
        out_shape=jax.ShapeDtypeStruct((rows_p, dim_out_p), out_dtype),
        grid=(n_row_tiles, n_col_tiles),
        in_specs=[
            pl.BlockSpec((bm, dim), lambda i, j: (i, 0)),        # x row tile
            pl.BlockSpec((dim, bn), lambda i, j: (0, j)),        # W column block
            pl.BlockSpec((1, bn), lambda i, j: (0, j)),          # bias column block
        ],
        out_specs=pl.BlockSpec((bm, bn), lambda i, j: (i, j)),
        scratch_shapes=[pltpu.VMEM((bm, dim), w.dtype)],         # normalized rows (bf16)
        compiler_params=pltpu.CompilerParams(
            dimension_semantics=("parallel", "arbitrary"),       # rows split across TCs
            vmem_limit_bytes=int(vmem_budget_bytes + 4 * 1024 * 1024),
        ),
    )(x2d, w_eff, b2d)

    return out2d[:rows, :dim_out].reshape(batch, seq, dim_out)


# ----------------------------------- main ------------------------------------
if __name__ == "__main__":
    # Small, lane-dense / MXU-friendly demo shapes: dim = dim_out = 128,
    # rows = batch*seq = 256 -> row tile 128 -> a 2-step "parallel" row grid.
    batch, seq, dim = 2, 128, 128

    key = jax.random.PRNGKey(0)
    kx, kw, kb, kg, kbe = jax.random.split(key, 5)

    x = jax.random.normal(kx, (batch, seq, dim), dtype=jnp.float32)

    # LayerNorm affine params (non-trivial so the gamma/beta fold is exercised;
    # PyTorch default init would be weight=1, bias=0).
    gamma = (1.0 + 0.1 * jax.random.normal(kg, (dim,))).astype(jnp.float32)
    beta = (0.1 * jax.random.normal(kbe, (dim,))).astype(jnp.float32)

    # fn: Linear(dim, dim). Weights fed to the MXU in bf16 (f32 accumulation).
    w = (jax.random.normal(kw, (dim, dim), dtype=jnp.float32) * 0.02).astype(jnp.bfloat16)
    b_lin = (jax.random.normal(kb, (dim,), dtype=jnp.float32) * 0.02)

    fwd = jax.jit(functools.partial(prenorm_linear, gamma=gamma, beta=beta,
                                    w=w, b=b_lin))
    out = jax.block_until_ready(fwd(x))

    # Pure-JAX f32 reference with the same (upcast) bf16 weights:
    # fn(LayerNorm(x)) — identical forward semantics to the PyTorch module.
    mean = jnp.mean(x, axis=-1, keepdims=True)
    var = jnp.mean((x - mean) ** 2, axis=-1, keepdims=True)
    y_ref = (x - mean) / jnp.sqrt(var + LN_EPS) * gamma + beta
    ref = jnp.einsum("bsd,de->bse", y_ref, w.astype(jnp.float32)) + b_lin

    assert out.shape == (batch, seq, dim), out.shape
    max_err = float(jnp.max(jnp.abs(out.astype(jnp.float32) - ref)))
    assert jnp.allclose(out.astype(jnp.float32), ref, atol=2e-2, rtol=2e-2), max_err

    print("KERNEL_OK")
</pallas_src>

<mosaic_0001>
module attributes {stable_mosaic.version = 11 : i64} {
  func.func @_prenorm_linear_kernel(%arg0: i32, %arg1: i32, %arg2: memref<128x128xf32, #tpu.memory_space<vmem>>, %arg3: memref<128x128xbf16, #tpu.memory_space<vmem>>, %arg4: memref<1x128xf32, #tpu.memory_space<vmem>>, %arg5: memref<128x128xf32, #tpu.memory_space<vmem>>, %arg6: memref<128x128xbf16, #tpu.memory_space<vmem>>) attributes {dimension_semantics = [#tpu.dimension_semantics<parallel>, #tpu.dimension_semantics<arbitrary>], iteration_bounds = array<i64: 2, 1>, scalar_prefetch = 0 : i64, scratch_operands = 1 : i64, tpu.core_type = #tpu.core_type<tc>, window_params = [{transform_indices = @transform_0, window_bounds = array<i64: 128, 128>}, {transform_indices = @transform_1, window_bounds = array<i64: 128, 128>}, {transform_indices = @transform_2, window_bounds = array<i64: 1, 128>}, {transform_indices = @transform_3, window_bounds = array<i64: 128, 128>}]} {
    %c0_i32 = arith.constant 0 : i32
    %0 = arith.cmpi eq, %arg1, %c0_i32 : i32
    %1 = arith.extui %0 : i1 to i32
    %c0_i32_0 = arith.constant 0 : i32
    %2 = arith.cmpi ne, %1, %c0_i32_0 : i32
    scf.if %2 {
      %c0_8 = arith.constant 0 : index
      %c0_9 = arith.constant 0 : index
      %10 = vector.load %arg2[%c0_8, %c0_9] : memref<128x128xf32, #tpu.memory_space<vmem>>, vector<128x128xf32>
      %cst_10 = arith.constant dense<0.000000e+00> : vector<128xf32>
      %11 = vector.multi_reduction <add>, %10, %cst_10 [1] : vector<128x128xf32> to vector<128xf32>
      %12 = vector.shape_cast %11 : vector<128xf32> to vector<128x1xf32>
      %cst_11 = arith.constant 1.280000e+02 : f32
      %13 = vector.broadcast %cst_11 : f32 to vector<128x1xf32>
      %14 = arith.divf %12, %13 : vector<128x1xf32>
      %15 = vector.broadcast %14 : vector<128x1xf32> to vector<128x128xf32>
      %16 = arith.subf %10, %15 : vector<128x128xf32>
      %17 = arith.mulf %16, %16 : vector<128x128xf32>
      %cst_12 = arith.constant dense<0.000000e+00> : vector<128xf32>
      %18 = vector.multi_reduction <add>, %17, %cst_12 [1] : vector<128x128xf32> to vector<128xf32>
      %19 = vector.shape_cast %18 : vector<128xf32> to vector<128x1xf32>
      %cst_13 = arith.constant 1.280000e+02 : f32
      %20 = vector.broadcast %cst_13 : f32 to vector<128x1xf32>
      %21 = arith.divf %19, %20 : vector<128x1xf32>
      %cst_14 = arith.constant 9.99999974E-6 : f32
      %22 = vector.broadcast %cst_14 : f32 to vector<128x1xf32>
      %23 = arith.addf %21, %22 : vector<128x1xf32>
      %24 = math.rsqrt %23 : vector<128x1xf32>
      %25 = vector.broadcast %24 : vector<128x1xf32> to vector<128x128xf32>
      %26 = arith.mulf %16, %25 : vector<128x128xf32>
      %27 = arith.truncf %26 : vector<128x128xf32> to vector<128x128xbf16>
      %c0_15 = arith.constant 0 : index
      %c0_16 = arith.constant 0 : index
      %28 = vector.load %arg6[%c0_15, %c0_16] : memref<128x128xbf16, #tpu.memory_space<vmem>>, vector<128x128xbf16>
      tpu.vector_store %arg6[%c0_15, %c0_16], %27 {strides = array<i32>} : memref<128x128xbf16, #tpu.memory_space<vmem>>, vector<128x128xbf16>,
    } else {
    }
    %c0 = arith.constant 0 : index
    %c0_1 = arith.constant 0 : index
    %3 = vector.load %arg6[%c0, %c0_1] : memref<128x128xbf16, #tpu.memory_space<vmem>>, vector<128x128xbf16>
    %c0_2 = arith.constant 0 : index
    %c0_3 = arith.constant 0 : index
    %4 = vector.load %arg3[%c0_2, %c0_3] : memref<128x128xbf16, #tpu.memory_space<vmem>>, vector<128x128xbf16>
    %cst = arith.constant dense<0.000000e+00> : vector<128x128xf32>
    %5 = tpu.matmul %3, %4, %cst {dimension_numbers = #tpu.dot_dimension_numbers<[1], [0], [0], [1], [0, 0, 1, 1], [], []>} : vector<128x128xbf16>, vector<128x128xbf16>, vector<128x128xf32> -> vector<128x128xf32>
    %c0_4 = arith.constant 0 : index
    %c0_5 = arith.constant 0 : index
    %6 = vector.load %arg4[%c0_4, %c0_5] : memref<1x128xf32, #tpu.memory_space<vmem>>, vector<1x128xf32>
    %7 = vector.broadcast %6 : vector<1x128xf32> to vector<128x128xf32>
    %8 = arith.addf %5, %7 : vector<128x128xf32>
    %c0_6 = arith.constant 0 : index
    %c0_7 = arith.constant 0 : index
    %9 = vector.load %arg5[%c0_6, %c0_7] : memref<128x128xf32, #tpu.memory_space<vmem>>, vector<128x128xf32>
    tpu.vector_store %arg5[%c0_6, %c0_7], %8 {strides = array<i32>} : memref<128x128xf32, #tpu.memory_space<vmem>>, vector<128x128xf32>,
    return
  }
  func.func @transform_0(%arg0: i32, %arg1: i32) -> (i32, i32) {
    %c0_i32 = arith.constant 0 : i32
    %c0_i32_0 = arith.constant 0 : i32
    return %arg0, %c0_i32 : i32, i32
  }
  func.func @transform_1(%arg0: i32, %arg1: i32) -> (i32, i32) {
    %c0_i32 = arith.constant 0 : i32
    %c0_i32_0 = arith.constant 0 : i32
    return %c0_i32, %arg1 : i32, i32
  }
  func.func @transform_2(%arg0: i32, %arg1: i32) -> (i32, i32) {
    %c0_i32 = arith.constant 0 : i32
    %c0_i32_0 = arith.constant 0 : i32
    return %c0_i32, %arg1 : i32, i32
  }
  func.func @transform_3(%arg0: i32, %arg1: i32) -> (i32, i32) {
    %c0_i32 = arith.constant 0 : i32
    return %arg0, %arg1 : i32, i32
  }
}

</mosaic_0001>

<bundles_post_ra>
// kernel: prenorm_linear.1
= control target key start
LH: loop header
LB: loop body
LE: loop exit
PB: predicated region body
PF: predicated region fallthrough
CT: control target
= control target key end

     0   :  { %s1951_s0 = inlined_call_operand.hbm [shape: f32[256,128], index: 0, kind: input, shape index: {}]   ;;  %s1952_s1 = inlined_call_operand.hbm [shape: bf16[128,128], index: 1, kind: input, shape index: {}]   ;;  %s1953_s2 = inlined_call_operand.vmem [shape: f32[1,128], index: 2, kind: input, shape index: {}]   ;;  %s1954_s3 = inlined_call_operand.hbm [shape: f32[256,128], index: 3, kind: output, shape index: {}]  }
   0x1   :  { %1955 = sst [smem:[#allocation12_spill]] %s1952_s1 }
   0x2   :  { %8 = vsyncpa [#allocation4], 0 }
   0x3   :  { %10 = vsyncpa [#allocation4 + $0x1], 0 }
   0x4   :  { %11 = vsyncpa [#allocation7], 0 }
   0x5   :  { %12 = vsyncpa [#allocation5], 0 }
   0x6   :  { %14 = vsyncpa [#allocation5 + $0x1], 0  ;;  %s1407_s12 = smov 0   ;;  %s1409_s13 = smov 0  }
   0x7   :  { %s1411_s14 = smov 0   ;;  %s1413_s15 = smov 0  }
   0x8   :  { %s1415_s16 = smov 0   ;;  %s1417_s17 = smov 0  }
   0x9 LB: > { %s945_s18 = sadd.s32 4294967295, %s1377_s17   ;;  %s946_s19 = sadd.s32 4294967294, %s1377_s17   ;;  %s1377_s17 = sphi %s1417_s17, %s20_s17   ;;  %s1373_s16 = sphi %s1415_s16, %s1980_s16   ;;  %s1369_s15 = sphi %s1413_s15, %s1979_s15   ;;  %s1365_s14 = sphi %s1411_s14, %s1978_s14   ;;  %s1361_s13 = sphi %s1409_s13, %s1977_s13   ;;  %s1357_s12 = sphi %s1407_s12, %s1976_s12  }
   0xa   : > { %p52_p0 = scmp.ne.s32.totalorder %s1361_s13, %s1357_s12  ;;  %p1441_p1 = scmp.eq.s32.totalorder %s945_s18, 0 }
   0xb   : > { %p1445_p2 = scmp.eq.s32.totalorder %s945_s18, 1  ;;  %p136_p3 = scmp.eq.s32.totalorder %s946_s19, 1 }
   0xc   : > { %p1451_p4 = por %p1441_p1, %p52_p0  ;;  %p947_p5 = scmp.ge.s32.totalorder %s1377_s17, 1 }
   0xd   : > { %p1456_p6 = por %p136_p3, %p52_p0  ;;  %p143_p7 = scmp.lt.s32.totalorder %s1377_s17, 3 }
   0xe   : > { %s1960_s1 = sld [smem:[#allocation12_spill]]  ;;  %s1379_s28 = smov [#allocation6]  }
   0xf   : > { %p1464_p8 = pnand %p947_p5, %p143_p7  ;;  %s158_s29 = sshll.u32 %s1379_s28, 4  ;;  %s159_s29 = int_to_ptr.vmem [resolvable:$true] %s158_s29 }
  0x10   : > { %p950_p11 = scmp.ge.s32.totalorder %s1377_s17, 2  ;;  %s1380_s30 = smov 64  }
  0x11   : > { %p1124_p9 = pneg %p1464_p8  ;;  %s1381_s4 = smov 4  }
  0x12   : > { %s32_s5 = sadd.s32 1, %s1373_s16  ;;  %s39_s6 = sadd.s32 1, %s1365_s14 }
  0x13   : > { %p1125_p10 = pnand %p1124_p9, %p1441_p1  ;;  %p34_p12 = scmp.ge.s32.totalorder %s32_s5, 2 }
  0x14   : > { %s156_s26 = sshll.u32 %s1960_s1, 4  ;;  %p46_p13 = scmp.ne.s32.totalorder %s1365_s14, %s1361_s13  ;;  %s157_s26 = int_to_ptr.hbm [resolvable:$true] %s156_s26 }
  0x15   : > { %1127 = dma.hbm_to_vmem [thread:$0]  (!%p1125_p10), %s157_s26, 1024, %s159_s29, [#allocation7], %s1380_s30, %s1380_s30, %s1381_s4  }
  0x16   : > { %p47_p0 = scmp.eq.s32.totalorder %s1377_s17, 0  ;;  %s1982_s5 = smov (%p34_p12, %s32_s5), 0 }
  0x17   : > { %p1486_p5 = por %p1445_p2, %p46_p13  ;;  %s36_s9 = ssub.s32 %s1373_s16, %s1982_s5 }
  0x18   : > { %p1480_p3 = por %p47_p0, %p46_p13  ;;  %p1137_p7 = scmp.lt.s32.totalorder %s1377_s17, 2 }
  0x19   : > { %p37_p9 = scmp.eq.s32.totalorder %s36_s9, 0  ;;  %s178_s10 = sand.u32 1, %s1365_s14  }
  0x1a   : > { %s951_s11 = sshll.u32 %s178_s10, 7  ;;  %s1027_s19 = sshll.u32 %s1373_s16, 7 }
  0x1b   : > { %s1495_s18 = scalar_select %p37_p9, %s1365_s14, %s39_s6  }
  0x1c   : > { %s187_s26 = scalar_lea.hbm %s1951_s0, %s1027_s19  ;;  %s182_s28 = scalar_lea.vmem [#allocation3], %s951_s11 }
  0x1d   : > { %s190_s29 = sshll.u32 %s182_s28, 4  ;;  %s188_s21 = sshll.u32 %s187_s26, 4  ;;  %s191_s29 = int_to_ptr.vmem [resolvable:$true] %s190_s29  ;;  %s189_s21 = int_to_ptr.hbm [resolvable:$true] %s188_s21 }
  0x1e   : > { %p1129_p2 = pnand %p1137_p7, %p1480_p3  ;;  %s179_s30 = scalar_lea.sflag [#allocation4], %s178_s10 }
  0x1f   : > { %s1382_s4 = smov 128   ;;  %s1383_s1 = smov 8  }
  0x20   : > { %1131 = dma.hbm_to_vmem [thread:$0]  (!%p1129_p2), %s189_s21, 2048, %s191_s29, %s179_s30, %s1382_s4, %s1382_s4, %s1383_s1  }
  0x21   : > { %202 = sbr.rel (%p1464_p8) target bundleno = 499 (0x1f3), region = 32  ;;  %s1506_s6 = sand.u32 (!%p1464_p8), 1, %s1361_s13  }
  0x22   : > { %s955_s9 = sshll.u32 (!%p1464_p8), %s1506_s6, 7  ;;  %s205_s11 = scalar_lea.sflag (!%p1464_p8), [#allocation4], %s1506_s6 }
  0x23   : > { %s1512_s19 = scalar_lea.vmem (!%p1464_p8), [#allocation3], %s955_s9 }
  0x26   : > { %1344 = dma.done.wait (%p1451_p4), %s205_s11, 2048  }
  0x27   : > { %1346 = vsyncadd (%p1451_p4), %s205_s11, 4294965248 }
  0x28   : > { %1348 = dma.done.wait (%p1441_p1), [#allocation7], 1024  }
  0x29   : > { %1350 = vsyncadd (%p1441_p1), [#allocation7], 4294966272  ;;  %v261_v0 = vld [vmem:[%s1512_s19 + $0x60] sm:$0xff]  ;;  %v262_v3 = vld [vmem:[%s1512_s19 + $0x68] sm:$0xff]  ;;  %v1384_v16 = vmov 128.0   ;;  %s1894_s22 = scalar_lea.vmem [#allocation8], %s955_s9 }
  0x2a   : > { %v257_v1 = vld [vmem:[%s1512_s19 + $0x40] sm:$0xff]  ;;  %289 = vadd.xlane.f32.xlu1 %v261_v0  ;;  %v258_v4 = vld [vmem:[%s1512_s19 + $0x48] sm:$0xff]  ;;  %v259_v8 = vld [vmem:[%s1512_s19 + $0x50] sm:$0xff]  ;;  %1197 = vrcp.f32 %v1384_v16  ;;  %s1044_s27 = sshll.u32 %s1369_s15, 7  ;;  %s835_s25 = sshll.u32 %s1894_s22, 4  ;;  %s836_s25 = int_to_ptr.vmem [resolvable:$true] %s835_s25 }
  0x2b   : > { %v1525_v2 = vld [vmem:[%s1512_s19] sm:$0xff]  ;;  %281 = vadd.xlane.f32.xlu0 %v257_v1  ;;  %v250_v5 = vld [vmem:[%s1512_s19 + $0x8] sm:$0xff]  ;;  %v1538_v9 = vld [vmem:[%s1512_s19 + $0x58] sm:$0xff]  ;;  %s834_s24 = scalar_lea.hbm %s1954_s3, %s1044_s27  ;;  %s822_s15 = scalar_lea.sflag [#allocation5], %s1506_s6 }
  0x2c   : > { %265 = vadd.xlane.f32.xlu2 %v1525_v2  ;;  %v253_v6 = vld [vmem:[%s1512_s19 + $0x20] sm:$0xff]  ;;  %v1533_v7 = vld [vmem:[%s1512_s19 + $0x28] sm:$0xff]  ;;  %v1541_v10 = vld [vmem:[%s1512_s19 + $0x70] sm:$0xff]  ;;  %s837_s26 = sshll.u32 %s834_s24, 4  ;;  %s1311_s4 = scalar_lea.hbm %s1954_s3, 256  ;;  %s838_s26 = int_to_ptr.hbm [resolvable:$true] %s837_s26 }
  0x2d   : > { %v1544_v11 = vld [vmem:[%s1512_s19 + $0x78] sm:$0xff]  ;;  %v1550_v12 = vld [vmem:[%s1512_s19 + $0x10] sm:$0xff]  ;;  %s1305_s28 = sshra.s32 %s838_s26, 4  ;;  %s1306_s28 = int_to_ptr.hbm [resolvable:$true] %s1305_s28 }
  0x2e   : > { %v1553_v13 = vld [vmem:[%s1512_s19 + $0x18] sm:$0xff]  ;;  %v1556_v14 = vld [vmem:[%s1512_s19 + $0x30] sm:$0xff]  ;;  %s1307_s29 = scalar_lea.hbm %s1306_s28, 128  ;;  %p1312_p10 = scmp.lt.s32.totalorder %s1306_s28, %s1954_s3 }
  0x2f   : > { %v1562_v15 = vld [vmem:[%s1512_s19 + $0x38] sm:$0xff]  ;;  %p1308_p1 = scmp.ne.s32.totalorder %s1306_s28, %s1307_s29  ;;  %p1313_p12 = scmp.lt.s32.totalorder %s1311_s4, %s1307_s29 }
  0x30   : > { %v1198_v17 = vpop.eup %1197 }
  0x31   : > { %v298_v18 = vmul.f32 128.0, %v1198_v17  ;;  %vm302_vm0 = vweird.f32 %v1198_v17  ;;  %p1309_p4 = pnand %p1308_p1, %p1486_p5  ;;  %p1314_p13 = por %p1313_p12, %p1312_p10 }
  0x32   : > { %291 = vadd.xlane.f32.xlu1 %v262_v3 }
  0x33   : > { %283 = vadd.xlane.f32.xlu0 %v258_v4  ;;  %v299_v19 = vsub.f32 1.0, %v298_v18  ;;  %p1310_p8 = pneg %p1309_p4 }
  0x34   : > { %267 = vadd.xlane.f32.xlu2 %v250_v5 }
  0x35   : > { %v300_v20 = vmul.f32 %v1198_v17, %v299_v19  ;;  %p1315_p0 = pnand %p1314_p13, %p1310_p8 }
  0x37   : > { %v301_v21 = vadd.f32 %v1198_v17, %v300_v20 }
  0x39   : > { %v1565_v22 = vsel %vm302_vm0, %v1198_v17, %v301_v21 }
  0x3a   : > { %275 = vadd.xlane.f32.xlu1 %v1533_v7 }
  0x3b   : > { %273 = vadd.xlane.f32.xlu0 %v253_v6 }
  0x3c   : > { %285 = vadd.xlane.f32.xlu2 %v259_v8 }
  0x42   : > { %293 = vadd.xlane.f32.xlu1 %v1541_v10 }
  0x43   : > { %287 = vadd.xlane.f32.xlu0 %v1538_v9 }
  0x44   : > { %295 = vadd.xlane.f32.xlu2 %v1544_v11 }
  0x4a   : > { %271 = vadd.xlane.f32.xlu1 %v1553_v13 }
  0x4b   : > { %269 = vadd.xlane.f32.xlu0 %v1550_v12 }
  0x4c   : > { %277 = vadd.xlane.f32.xlu2 %v1556_v14 }
  0x53   : > { %279 = vadd.xlane.f32.xlu0 %v1562_v15 }
  0x9d   : > { %v290_v23 = vpop.xlane.xlu1 %289 }
  0x9e   : > { %v282_v24 = vpop.xlane.xlu0 %281  ;;  %v316_v25 = vmul.f32 %v1565_v22, %v290_v23 }
  0x9f   : > { %v312_v26 = vmul.f32 %v1565_v22, %v282_v24  ;;  %v266_v27 = vpop.xlane.xlu2 %265 }
  0xa0   : > { %v1569_v28 = vsub.f32 %v261_v0, %v316_v25  ;;  %v304_v41 = vmul.f32 %v1565_v22, %v266_v27  ;;  %v1040_v27 = vld [vmem:[#allocation6 + $0x20] sm:$0xff] }
  0xa1   : > { %v1571_v29 = vsub.f32 %v257_v1, %v312_v26  ;;  %v1043_v26 = vld [vmem:[#allocation6 + $0x38] sm:$0xff] }
  0xa2   : > { %v348_v31 = vmul.f32 %v1569_v28, %v1569_v28  ;;  %v1594_v47 = vsub.f32 %v1525_v2, %v304_v41  ;;  %1093 = vmatpush.bf16.msra.mxu2 %v1043_v26  ;;  %1094 = vmatpush.bf16.msra.mxu3 %v1043_v26 }
  0xa3   : > { %v344_v30 = vmul.f32 %v1571_v29, %v1571_v29  ;;  %756 = vmatpush.bf16.msra.mxu0 %v1043_v26  ;;  %1092 = vmatpush.bf16.msra.mxu1 %v1043_v26 }
  0xa4   : > { %376 = vadd.xlane.f32.xlu0 %v348_v31  ;;  %v336_v55 = vmul.f32 %v1594_v47, %v1594_v47 }
  0xa5   : > { %368 = vadd.xlane.f32.xlu1 %v344_v30  ;;  %v292_v32 = vpop.xlane.xlu1 %291 }
  0xa6   : > { %v284_v33 = vpop.xlane.xlu0 %283  ;;  %v317_v34 = vmul.f32 %v1565_v22, %v292_v32 }
  0xa7   : > { %v313_v35 = vmul.f32 %v1565_v22, %v284_v33  ;;  %v268_v36 = vpop.xlane.xlu2 %267 }
  0xa8   : > { %v305_v37 = vmul.f32 %v1565_v22, %v268_v36  ;;  %v1580_v38 = vsub.f32 %v262_v3, %v317_v34  ;;  %v1039_v34 = vld [vmem:[#allocation6 + $0x18] sm:$0xff] }
  0xa9   : > { %v1582_v39 = vsub.f32 %v258_v4, %v313_v35 }
  0xaa   : > { %v1584_v40 = vsub.f32 %v250_v5, %v305_v37  ;;  %v349_v42 = vmul.f32 %v1580_v38, %v1580_v38 }
  0xab   : > { %v345_v43 = vmul.f32 %v1582_v39, %v1582_v39 }
  0xac   : > { %v337_v44 = vmul.f32 %v1584_v40, %v1584_v40 }
  0xad   : > { %378 = vadd.xlane.f32.xlu1 %v349_v42  ;;  %370 = vadd.xlane.f32.xlu2 %v345_v43  ;;  %v276_v46 = vpop.xlane.xlu1 %275  ;;  %v1038_v42 = vld [vmem:[#allocation6 + $0x10] sm:$0xff] }
  0xae   : > { %354 = vadd.xlane.f32.xlu0 %v337_v44  ;;  %v274_v45 = vpop.xlane.xlu0 %273  ;;  %v309_v52 = vmul.f32 %v1565_v22, %v276_v46 }
  0xaf   : > { %v308_v48 = vmul.f32 %v1565_v22, %v274_v45  ;;  %v286_v49 = vpop.xlane.xlu2 %285 }
  0xb0   : > { %v314_v50 = vmul.f32 %v1565_v22, %v286_v49  ;;  %v1610_v57 = vsub.f32 %v1533_v7, %v309_v52 }
  0xb1   : > { %v1598_v51 = vsub.f32 %v253_v6, %v308_v48 }
  0xb2   : > { %v1601_v53 = vsub.f32 %v259_v8, %v314_v50  ;;  %v341_v0 = vmul.f32 %v1610_v57, %v1610_v57 }
  0xb3   : > { %v340_v54 = vmul.f32 %v1598_v51, %v1598_v51 }
  0xb4   : > { %v346_v56 = vmul.f32 %v1601_v53, %v1601_v53 }
  0xb5   : > { %360 = vadd.xlane.f32.xlu1 %v340_v54  ;;  %352 = vadd.xlane.f32.xlu2 %v336_v55  ;;  %v294_v59 = vpop.xlane.xlu1 %293 }
  0xb6   : > { %372 = vadd.xlane.f32.xlu0 %v346_v56  ;;  %v288_v58 = vpop.xlane.xlu0 %287  ;;  %v318_v1 = vmul.f32 %v1565_v22, %v294_v59  ;;  %v1037_v56 = vld [vmem:[#allocation6 + $0x8] sm:$0xff] }
  0xb7   : > { %v315_v60 = vmul.f32 %v1565_v22, %v288_v58  ;;  %v296_v61 = vpop.xlane.xlu2 %295 }
  0xb8   : > { %v319_v62 = vmul.f32 %v1565_v22, %v296_v61  ;;  %v1628_v5 = vsub.f32 %v1541_v10, %v318_v1 }
  0xb9   : > { %v1615_v63 = vsub.f32 %v1538_v9, %v315_v60 }
  0xba   : > { %v1621_v2 = vsub.f32 %v1544_v11, %v319_v62  ;;  %v350_v17 = vmul.f32 %v1628_v5, %v1628_v5 }
  0xbb   : > { %v347_v3 = vmul.f32 %v1615_v63, %v1615_v63 }
  0xbc   : > { %v351_v4 = vmul.f32 %v1621_v2, %v1621_v2 }
  0xbd   : > { %374 = vadd.xlane.f32.xlu1 %v347_v3  ;;  %362 = vadd.xlane.f32.xlu2 %v341_v0  ;;  %v272_v7 = vpop.xlane.xlu1 %271 }
  0xbe   : > { %382 = vadd.xlane.f32.xlu0 %v351_v4  ;;  %v270_v6 = vpop.xlane.xlu0 %269  ;;  %v307_v18 = vmul.f32 %v1565_v22, %v272_v7  ;;  %v1036_v7 = vld [vmem:[#allocation6] sm:$0xff] }
  0xbf   : > { %v306_v8 = vmul.f32 %v1565_v22, %v270_v6  ;;  %v278_v9 = vpop.xlane.xlu2 %277 }
  0xc0   : > { %v310_v11 = vmul.f32 %v1565_v22, %v278_v9  ;;  %v1646_v21 = vsub.f32 %v1553_v13, %v307_v18  ;;  %v1042_v13 = vld [vmem:[#allocation6 + $0x30] sm:$0xff] }
  0xc1   : > { %v1633_v16 = vsub.f32 %v1550_v12, %v306_v8  ;;  %1096 = vmatpush.bf16.msra.mxu2 %v1042_v13  ;;  %1097 = vmatpush.bf16.msra.mxu3 %v1042_v13 }
  0xc2   : > { %v1639_v19 = vsub.f32 %v1556_v14, %v310_v11  ;;  %v339_v14 = vmul.f32 %v1646_v21, %v1646_v21  ;;  %757 = vmatpush.bf16.msra.mxu0 %v1042_v13  ;;  %1095 = vmatpush.bf16.msra.mxu1 %v1042_v13 }
  0xc3   : > { %v338_v10 = vmul.f32 %v1633_v16, %v1633_v16 }
  0xc4   : > { %v342_v20 = vmul.f32 %v1639_v19, %v1639_v19 }
  0xc5   : > { %356 = vadd.xlane.f32.xlu1 %v338_v10  ;;  %380 = vadd.xlane.f32.xlu2 %v350_v17 }
  0xc6   : > { %364 = vadd.xlane.f32.xlu0 %v342_v20  ;;  %v280_v12 = vpop.xlane.xlu0 %279 }
  0xc7   : > { %v311_v23 = vmul.f32 %v1565_v22, %v280_v12 }
  0xc9   : > { %v1650_v24 = vsub.f32 %v1562_v15, %v311_v23  ;;  %v1041_v15 = vld [vmem:[#allocation6 + $0x28] sm:$0xff] }
  0xca   : > { %1099 = vmatpush.bf16.msra.mxu2 %v1041_v15  ;;  %1100 = vmatpush.bf16.msra.mxu3 %v1041_v15 }
  0xcb   : > { %v343_v25 = vmul.f32 %v1650_v24, %v1650_v24  ;;  %758 = vmatpush.bf16.msra.mxu0 %v1041_v15  ;;  %1098 = vmatpush.bf16.msra.mxu1 %v1041_v15 }
  0xcd   : > { %366 = vadd.xlane.f32.xlu1 %v343_v25  ;;  %358 = vadd.xlane.f32.xlu2 %v339_v14 }
  0xce   : > { %1102 = vmatpush.bf16.msra.mxu2 %v1040_v27  ;;  %1103 = vmatpush.bf16.msra.mxu3 %v1040_v27 }
  0xcf   : > { %759 = vmatpush.bf16.msra.mxu0 %v1040_v27  ;;  %1101 = vmatpush.bf16.msra.mxu1 %v1040_v27 }
  0xd2   : > { %1105 = vmatpush.bf16.msra.mxu2 %v1039_v34  ;;  %1106 = vmatpush.bf16.msra.mxu3 %v1039_v34 }
  0xd3   : > { %760 = vmatpush.bf16.msra.mxu0 %v1039_v34  ;;  %1104 = vmatpush.bf16.msra.mxu1 %v1039_v34 }
  0xd6   : > { %1108 = vmatpush.bf16.msra.mxu2 %v1038_v42  ;;  %1109 = vmatpush.bf16.msra.mxu3 %v1038_v42 }
  0xd7   : > { %761 = vmatpush.bf16.msra.mxu0 %v1038_v42  ;;  %1107 = vmatpush.bf16.msra.mxu1 %v1038_v42 }
  0xda   : > { %1111 = vmatpush.bf16.msra.mxu2 %v1037_v56  ;;  %1112 = vmatpush.bf16.msra.mxu3 %v1037_v56 }
  0xdb   : > { %762 = vmatpush.bf16.msra.mxu0 %v1037_v56  ;;  %1110 = vmatpush.bf16.msra.mxu1 %v1037_v56 }
  0xde   : > { %1114 = vmatpush.bf16.msra.mxu2 %v1036_v7  ;;  %1115 = vmatpush.bf16.msra.mxu3 %v1036_v7 }
  0xdf   : > { %763 = vmatpush.bf16.msra.mxu0 %v1036_v7  ;;  %1113 = vmatpush.bf16.msra.mxu1 %v1036_v7 }
 0x117   : > { %v377_v31 = vpop.xlane.xlu0 %376 }
 0x118   : > { %v369_v30 = vpop.xlane.xlu1 %368  ;;  %v396_v33 = vmul.f32 %v377_v31, %v1565_v22 }
 0x119   : > { %v392_v32 = vmul.f32 %v369_v30, %v1565_v22 }
 0x11a   : > { %v1660_v36 = vadd.f32 1e-05, %v396_v33 }
 0x11b   : > { %v1658_v35 = vadd.f32 1e-05, %v392_v32 }
 0x11c   : > { %vm542_vm4 = vweird.f32 %v1660_v36 }
 0x11d   : > { %1199 = vrsqrt.f32 %v1658_v35  ;;  %vm502_vm1 = vweird.f32 %v1658_v35 }
 0x11e   : > { %1201 = vrsqrt.f32 %v1660_v36 }
 0x120   : > { %v379_v37 = vpop.xlane.xlu1 %378  ;;  %v371_v41 = vpop.xlane.xlu2 %370 }
 0x121   : > { %v397_v43 = vmul.f32 %v379_v37, %v1565_v22  ;;  %v355_v44 = vpop.xlane.xlu0 %354  ;;  %v393_v45 = vmul.f32 %v371_v41, %v1565_v22 }
 0x122   : > { %v385_v46 = vmul.f32 %v355_v44, %v1565_v22 }
 0x123   : > { %v1667_v48 = vpop.eup %1199  ;;  %v1669_v49 = vadd.f32 1e-05, %v397_v43  ;;  %v1671_v50 = vadd.f32 1e-05, %v393_v45 }
 0x124   : > { %v1673_v52 = vpop.eup %1201  ;;  %v497_v54 = vmul.f32 %v1667_v48, %v1658_v35  ;;  %v1677_v55 = vadd.f32 1e-05, %v385_v46  ;;  %vm503_vm3 = vweird.f32 %v1667_v48 }
 0x125   : > { %v537_v58 = vmul.f32 %v1673_v52, %v1660_v36  ;;  %1203 = vrsqrt.f32 %v1669_v49  ;;  %vm543_vm2 = vweird.f32 %v1673_v52  ;;  %vm552_vm7 = vweird.f32 %v1669_v49  ;;  %vm1725_vm9 = vmor %vm502_vm1, %vm503_vm3 }
 0x126   : > { %v498_v59 = vmul.f32 %v1667_v48, %v497_v54  ;;  %1205 = vrsqrt.f32 %v1677_v55  ;;  %vm1711_vm5 = vmor %vm542_vm4, %vm543_vm2  ;;  %vm512_vm11 = vweird.f32 %v1671_v50  ;;  %vm432_vm13 = vweird.f32 %v1677_v55 }
 0x127   : > { %v538_v60 = vmul.f32 %v1673_v52, %v537_v58  ;;  %1207 = vrsqrt.f32 %v1671_v50 }
 0x128   : > { %v361_v61 = vpop.xlane.xlu1 %360  ;;  %v353_v62 = vpop.xlane.xlu2 %352  ;;  %v499_v0 = vmul.f32 0.5, %v498_v59 }
 0x129   : > { %v539_v1 = vmul.f32 0.5, %v538_v60  ;;  %v388_v3 = vmul.f32 %v361_v61, %v1565_v22  ;;  %v373_v4 = vpop.xlane.xlu0 %372  ;;  %v384_v6 = vmul.f32 %v353_v62, %v1565_v22 }
 0x12a   : > { %v394_v8 = vmul.f32 %v373_v4, %v1565_v22  ;;  %v500_v23 = vsub.f32 1.5, %v499_v0 }
 0x12b   : > { %v1204_v9 = vpop.eup %1203  ;;  %v540_v11 = vsub.f32 1.5, %v539_v1  ;;  %v1689_v17 = vadd.f32 1e-05, %v388_v3  ;;  %v1699_v25 = vadd.f32 1e-05, %v384_v6 }
 0x12c   : > { %v1691_v18 = vpop.eup %1205  ;;  %v547_v10 = vmul.f32 %v1204_v9, %v1669_v49  ;;  %v1694_v20 = vadd.f32 1e-05, %v394_v8  ;;  %v501_v34 = vmul.f32 %v1667_v48, %v500_v23  ;;  %vm553_vm6 = vweird.f32 %v1204_v9 }
 0x12d   : > { %v1208_v12 = vpop.eup %1207  ;;  %v427_v14 = vmul.f32 %v1691_v18, %v1677_v55  ;;  %1209 = vrsqrt.f32 %v1689_v17  ;;  %v541_v15 = vmul.f32 %v1673_v52, %v540_v11  ;;  %vm554_vm10 = vmor %vm552_vm7, %vm553_vm6  ;;  %vm433_vm14 = vweird.f32 %v1691_v18 }
 0x12e   : > { %v548_v26 = vmul.f32 %v1204_v9, %v547_v10  ;;  %v507_v13 = vmul.f32 %v1208_v12, %v1671_v50  ;;  %1211 = vrsqrt.f32 %v1694_v20  ;;  %vm513_vm8 = vweird.f32 %v1208_v12  ;;  %vm1765_vm0 = vmor %vm432_vm13, %vm433_vm14 }
 0x12f   : > { %v428_v30 = vmul.f32 %v1691_v18, %v427_v14  ;;  %1213 = vrsqrt.f32 %v1699_v25  ;;  %v545_v46 = vsel %vm1711_vm5, %v1673_v52, %v541_v15  ;;  %v505_v52 = vsel %vm1725_vm9, %v1667_v48, %v501_v34  ;;  %vm514_vm12 = vmor %vm512_vm11, %vm513_vm8 }
 0x130   : > { %v549_v27 = vmul.f32 0.5, %v548_v26  ;;  %v508_v31 = vmul.f32 %v1208_v12, %v507_v13  ;;  %v375_v32 = vpop.xlane.xlu1 %374  ;;  %v363_v33 = vpop.xlane.xlu2 %362  ;;  %v588_v3 = vmul.f32 %v545_v46, %v1569_v28  ;;  %v584_v11 = vmul.f32 %v505_v52, %v1571_v29 }
 0x131   : > { %v383_v37 = vpop.xlane.xlu0 %382  ;;  %v395_v44 = vmul.f32 %v375_v32, %v1565_v22  ;;  %v429_v58 = vmul.f32 0.5, %v428_v30  ;;  %v389_v60 = vmul.f32 %v363_v33, %v1565_v22  ;;  %vm422_vm1 = vweird.f32 %v1699_v25 }
 0x132   : > { %v550_v42 = vsub.f32 1.5, %v549_v27  ;;  %v509_v43 = vmul.f32 0.5, %v508_v31  ;;  %v399_v36 = vmul.f32 %v383_v37, %v1565_v22  ;;  %vm522_vm3 = vweird.f32 %v1694_v20 }
 0x133   : > { %v1716_v45 = vpop.eup %1209  ;;  %v1738_v0 = vadd.f32 1e-05, %v395_v44  ;;  %v430_v6 = vsub.f32 1.5, %v429_v58  ;;  %vm462_vm7 = vweird.f32 %v1689_v17 }
 0x134   : > { %v551_v56 = vmul.f32 %v1204_v9, %v550_v42  ;;  %v510_v59 = vsub.f32 1.5, %v509_v43  ;;  %v1734_v49 = vpop.eup %1211  ;;  %v457_v62 = vmul.f32 %v1716_v45, %v1689_v17  ;;  %v1745_v50 = vadd.f32 1e-05, %v399_v36 }
 0x135   : > { %v1214_v1 = vpop.eup %1213  ;;  %v517_v48 = vmul.f32 %v1734_v49, %v1694_v20  ;;  %1215 = vrsqrt.f32 %v1738_v0  ;;  %v431_v29 = vmul.f32 %v1691_v18, %v430_v6  ;;  %vm523_vm4 = vweird.f32 %v1734_v49 }
 0x136   : > { %v555_v61 = vsel %vm554_vm10, %v1204_v9, %v551_v56  ;;  %v511_v35 = vmul.f32 %v1208_v12, %v510_v59  ;;  %v417_v8 = vmul.f32 %v1214_v1, %v1699_v25  ;;  %v1748_v9 = vadd.f32 1e-05, %v389_v60  ;;  %vm1814_vm8 = vmor %vm522_vm3, %vm523_vm4 }
 0x137   : > { %v589_v4 = vmul.f32 %v555_v61, %v1580_v38  ;;  %v518_v38 = vmul.f32 %v1734_v49, %v517_v48  ;;  %v458_v14 = vmul.f32 %v1716_v45, %v457_v62  ;;  %1217 = vrsqrt.f32 %v1745_v50 }
 0x138   : > { %v515_v7 = vsel %vm514_vm12, %v1208_v12, %v511_v35  ;;  %v357_v23 = vpop.xlane.xlu1 %356  ;;  %v418_v26 = vmul.f32 %v1214_v1, %v417_v8  ;;  %v381_v15 = vpop.xlane.xlu2 %380  ;;  %1219 = vrsqrt.f32 %v1748_v9  ;;  %vm423_vm15 = vweird.f32 %v1214_v1 }
 0x139   : > { %v1078_v10 = vpack.c.bf16 %v589_v4, %v588_v3  ;;  %v585_v28 = vmul.f32 %v515_v7, %v1582_v39  ;;  %v365_v13 = vpop.xlane.xlu0 %364  ;;  %v519_v39 = vmul.f32 0.5, %v518_v38  ;;  %v386_v30 = vmul.f32 %v357_v23, %v1565_v22  ;;  %vm424_vm2 = vmor %vm422_vm1, %vm423_vm15 }
 0x13a   : > { %v419_v27 = vmul.f32 0.5, %v418_v26  ;;  %v390_v31 = vmul.f32 %v365_v13, %v1565_v22  ;;  %v398_v32 = vmul.f32 %v381_v15, %v1565_v22  ;;  %v459_v33 = vmul.f32 0.5, %v458_v14 }
 0x13b   : > { %1090 = vst [vmem:[#allocation2 + $0x28] sm:$0xff] %v1078_v10   ;;  %v1068_v12 = vpack.c.bf16 %v585_v28, %v584_v11  ;;  %v1770_v41 = vadd.f32 1e-05, %v386_v30  ;;  %v1772_v42 = vpop.eup %1215  ;;  %v435_v43 = vsel %vm1765_vm0, %v1691_v18, %v431_v29  ;;  %v520_v44 = vsub.f32 1.5, %v519_v39 }
 0x13c   : > { %v420_v34 = vsub.f32 1.5, %v419_v27  ;;  %v1777_v36 = vadd.f32 1e-05, %v390_v31  ;;  %v527_v55 = vmul.f32 %v1772_v42, %v1738_v0  ;;  %v1784_v25 = vadd.f32 1e-05, %v398_v32 }
 0x13d   : > { %1088 = vst [vmem:[#allocation2 + $0x8] sm:$0xff] %v1068_v12   ;;  %v1779_v54 = vpop.eup %1217  ;;  %1221 = vrsqrt.f32 %v1770_v41  ;;  %v460_v58 = vsub.f32 1.5, %v459_v33  ;;  %v577_v52 = vmul.f32 %v435_v43, %v1584_v40  ;;  %v521_v4 = vmul.f32 %v1734_v49, %v520_v44 }
 0x13e   : > { %v421_v46 = vmul.f32 %v1214_v1, %v420_v34  ;;  %v1786_v56 = vpop.eup %1219  ;;  %v567_v59 = vmul.f32 %v1779_v54, %v1745_v50  ;;  %v528_v35 = vmul.f32 %v1772_v42, %v527_v55  ;;  %1223 = vrsqrt.f32 %v1777_v36 }
 0x13f   : > { %v467_v62 = vmul.f32 %v1786_v56, %v1748_v9  ;;  %1225 = vrsqrt.f32 %v1784_v25  ;;  %v461_v8 = vmul.f32 %v1716_v45, %v460_v58  ;;  %vm463_vm5 = vweird.f32 %v1716_v45 }
 0x140   : > { %v425_v18 = vsel %vm424_vm2, %v1214_v1, %v421_v46  ;;  %v367_v3 = vpop.xlane.xlu1 %366  ;;  %v568_v1 = vmul.f32 %v1779_v54, %v567_v59  ;;  %v359_v48 = vpop.xlane.xlu2 %358  ;;  %v529_v7 = vmul.f32 0.5, %v528_v35  ;;  %vm533_vm6 = vweird.f32 %v1772_v42  ;;  %vm1821_vm10 = vmor %vm462_vm7, %vm463_vm5 }
 0x141   : > { %v576_v61 = vmul.f32 %v425_v18, %v1594_v47  ;;  %v468_v47 = vmul.f32 %v1786_v56, %v467_v62  ;;  %v391_v11 = vmul.f32 %v367_v3, %v1565_v22  ;;  %v387_v23 = vmul.f32 %v359_v48, %v1565_v22 }
 0x142   : > { %v1034_v60 = vld [vmem:[#allocation2 + $0x28] sm:$0xff]  ;;  %v530_v28 = vsub.f32 1.5, %v529_v7  ;;  %vm532_vm9 = vweird.f32 %v1738_v0  ;;  %v569_v26 = vmul.f32 0.5, %v568_v1  ;;  %v525_v22 = vsel %vm1814_vm8, %v1734_v49, %v521_v4 }
 0x143   : > { %794 = vmatmul.bf16.vlgmr.msra.gmra.mxu3 %v1034_v60  ;;  %v1048_v40 = vpack.c.bf16 %v577_v52, %v576_v61  ;;  %v1805_v10 = vpop.eup %1221  ;;  %v469_v38 = vmul.f32 0.5, %v468_v47  ;;  %v1819_v13 = vadd.f32 1e-05, %v391_v11  ;;  %vm473_vm11 = vweird.f32 %v1786_v56  ;;  %vm534_vm12 = vmor %vm532_vm9, %vm533_vm6 }
 0x144   : > { %v1032_v6 = vld [vmem:[#allocation2 + $0x8] sm:$0xff]  ;;  %v531_v17 = vmul.f32 %v1772_v42, %v530_v28  ;;  %v1830_v12 = vpop.eup %1223  ;;  %v465_v0 = vsel %vm1821_vm10, %v1716_v45, %v461_v8  ;;  %vm472_vm13 = vweird.f32 %v1748_v9  ;;  %v437_v29 = vmul.f32 %v1805_v10, %v1770_v41 }
 0x145   : > { %784 = vmatmul.bf16.vlgmr.msra.gmra.mxu2 %v1032_v6  ;;  %1049 = vst [vmem:[#allocation2 + $0x30] sm:$0xff] %v1048_v40   ;;  %v470_v20 = vsub.f32 1.5, %v469_v38  ;;  %1227 = vrsqrt.f32 %v1819_v13  ;;  %v1226_v49 = vpop.eup %1225  ;;  %v477_v30 = vmul.f32 %v1830_v12, %v1777_v36  ;;  %v1845_v31 = vadd.f32 1e-05, %v387_v23  ;;  %vm474_vm14 = vmor %vm472_vm13, %vm473_vm11 }
 0x146   : > { %v535_v39 = vsel %vm534_vm12, %v1772_v42, %v531_v17  ;;  %v586_v45 = vmul.f32 %v525_v22, %v1601_v53  ;;  %v570_v9 = vsub.f32 1.5, %v569_v26  ;;  %v557_v33 = vmul.f32 %v1226_v49, %v1784_v25 }
 0x147   : > { %v471_v27 = vmul.f32 %v1786_v56, %v470_v20  ;;  %v587_v32 = vmul.f32 %v535_v39, %v1615_v63  ;;  %v580_v34 = vmul.f32 %v465_v0, %v1598_v51  ;;  %v478_v42 = vmul.f32 %v1830_v12, %v477_v30 }
 0x148   : > { %v438_v46 = vmul.f32 %v1805_v10, %v437_v29  ;;  %v558_v53 = vmul.f32 %v1226_v49, %v557_v33  ;;  %vm572_vm15 = vweird.f32 %v1745_v50  ;;  %1229 = vrsqrt.f32 %v1845_v31 }
 0x149   : > { %v475_v37 = vsel %vm474_vm14, %v1786_v56, %v471_v27  ;;  %v1073_v43 = vpack.c.bf16 %v587_v32, %v586_v45  ;;  %v479_v63 = vmul.f32 0.5, %v478_v42  ;;  %v571_v51 = vmul.f32 %v1779_v54, %v570_v9 }
 0x14a   : > { %v581_v44 = vmul.f32 %v475_v37, %v1610_v57  ;;  %vm573_vm0 = vweird.f32 %v1779_v54  ;;  %v559_v18 = vmul.f32 0.5, %v558_v53  ;;  %v439_v60 = vmul.f32 0.5, %v438_v46 }
 0x14b   : > { %v1228_v58 = vpop.eup %1227  ;;  %1089 = vst [vmem:[#allocation2 + $0x20] sm:$0xff] %v1073_v43   ;;  %v480_v59 = vsub.f32 1.5, %v479_v63  ;;  %vm563_vm1 = vweird.f32 %v1226_v49  ;;  %vm574_vm2 = vmor %vm572_vm15, %vm573_vm0  ;;  %vm562_vm3 = vweird.f32 %v1784_v25  ;;  %vm482_vm4 = vweird.f32 %v1777_v36 }
 0x14c   : > { %v1028_v55 = vld [vmem:[#allocation2 + $0x30] sm:$0xff]  ;;  %v1058_v56 = vpack.c.bf16 %v581_v44, %v580_v34  ;;  %v487_v57 = vmul.f32 %v1228_v58, %v1819_v13  ;;  %v560_v52 = vsub.f32 1.5, %v559_v18  ;;  %v575_v35 = vsel %vm574_vm2, %v1779_v54, %v571_v51  ;;  %vm564_vm6 = vmor %vm562_vm3, %vm563_vm1 }
 0x14d   : > { %764 = vmatmul.bf16.vlgmr.msra.gmra.mxu0 %v1028_v55  ;;  %v481_v4 = vmul.f32 %v1830_v12, %v480_v59  ;;  %vm483_vm5 = vweird.f32 %v1830_v12  ;;  %v440_v48 = vsub.f32 1.5, %v439_v60  ;;  %v591_v40 = vmul.f32 %v575_v35, %v1621_v2 }
 0x14e   : > { %1086 = vst [vmem:[#allocation2 + $0x18] sm:$0xff] %v1058_v56   ;;  %v488_v61 = vmul.f32 %v1228_v58, %v487_v57  ;;  %v561_v62 = vmul.f32 %v1226_v49, %v560_v52  ;;  %v1230_v3 = vpop.eup %1229  ;;  %vm493_vm7 = vweird.f32 %v1228_v58  ;;  %vm1872_vm8 = vmor %vm482_vm4, %vm483_vm5  ;;  %vm492_vm9 = vweird.f32 %v1819_v13 }
 0x14f   : > { %v447_v50 = vmul.f32 %v1230_v3, %v1845_v31  ;;  %v485_v8 = vsel %vm1872_vm8, %v1830_v12, %v481_v4  ;;  %v441_v2 = vmul.f32 %v1805_v10, %v440_v48  ;;  %vm443_vm10 = vweird.f32 %v1805_v10  ;;  %vm494_vm11 = vmor %vm492_vm9, %vm493_vm7 }
 0x150   : > { %v489_v1 = vmul.f32 0.5, %v488_v61  ;;  %v565_v6 = vsel %vm564_vm6, %v1226_v49, %v561_v62  ;;  %vm442_vm12 = vweird.f32 %v1770_v41  ;;  %v582_v14 = vmul.f32 %v485_v8, %v1639_v19 }
 0x151   : > { %v590_v54 = vmul.f32 %v565_v6, %v1628_v5  ;;  %v448_v36 = vmul.f32 %v1230_v3, %v447_v50  ;;  %vm453_vm13 = vweird.f32 %v1230_v3  ;;  %vm444_vm14 = vmor %vm442_vm12, %vm443_vm10  ;;  %vm452_vm15 = vweird.f32 %v1845_v31 }
 0x152   : > { %v490_v7 = vsub.f32 1.5, %v489_v1  ;;  %v1033_v25 = vld [vmem:[#allocation2 + $0x20] sm:$0xff]  ;;  %v445_v13 = vsel %vm444_vm14, %v1805_v10, %v441_v2  ;;  %vm454_vm0 = vmor %vm452_vm15, %vm453_vm13 }
 0x153   : > { %v1083_v11 = vpack.c.bf16 %v591_v40, %v590_v54  ;;  %v449_v5 = vmul.f32 0.5, %v448_v36  ;;  %v578_v41 = vmul.f32 %v445_v13, %v1633_v16  ;;  %v1196_v10 = vld [vmem:[%s1953_s2] ss:$0 sm:$0xff] }
 0x154   : > { %v491_v28 = vmul.f32 %v1228_v58, %v490_v7 }
 0x155   : > { %v1030_v38 = vld [vmem:[#allocation2 + $0x18] sm:$0xff]  ;;  %789 = vmatmul.bf16.gmra.mxu2 %v1033_v25  ;;  %1091 = vst [vmem:[#allocation2 + $0x38] sm:$0xff] %v1083_v11   ;;  %v450_v15 = vsub.f32 1.5, %v449_v5 }
 0x156   : > { %v495_v23 = vsel %vm494_vm11, %v1228_v58, %v491_v28  ;;  %774 = vmatmul.bf16.vlgmr.msra.gmra.mxu1 %v1030_v38 }
 0x157   : > { %v583_v26 = vmul.f32 %v495_v23, %v1650_v24  ;;  %v451_v17 = vmul.f32 %v1230_v3, %v450_v15 }
 0x159   : > { %v1063_v22 = vpack.c.bf16 %v583_v26, %v582_v14  ;;  %v455_v20 = vsel %vm454_vm0, %v1230_v3, %v451_v17 }
 0x15a   : > { %v579_v12 = vmul.f32 %v455_v20, %v1646_v21 }
 0x15b   : > { %1087 = vst [vmem:[#allocation2 + $0x10] sm:$0xff] %v1063_v22  }
 0x15c   : > { %v1035_v19 = vld [vmem:[#allocation2 + $0x38] sm:$0xff]  ;;  %v1053_v0 = vpack.c.bf16 %v579_v12, %v578_v41 }
 0x15d   : > { %799 = vmatmul.bf16.gmra.mxu3 %v1035_v19 }
 0x15e   : > { %1085 = vst [vmem:[#allocation2] sm:$0xff] %v1053_v0  }
 0x162   : > { %v1031_v24 = vld [vmem:[#allocation2 + $0x10] sm:$0xff] }
 0x165   : > { %v1029_v29 = vld [vmem:[#allocation2] sm:$0xff] }
 0x166   : > { %779 = vmatmul.bf16.gmra.mxu1 %v1031_v24  ;;  %769 = vmatmul.bf16.gmra.mxu0 %v1029_v29 }
 0x1c6   : > { %v795_v49 = vpop.f32.mrf.mxu3 }
 0x1c7   : > { %v796_v39 = vadd.f32 %v1196_v10, %v795_v49 }
 0x1c8   : > { %v785_v27 = vpop.f32.mrf.mxu2 }
 0x1c9   : > { %v786_v30 = vadd.f32 %v1196_v10, %v785_v27  ;;  %817 = vst [vmem:[%s1894_s22 + $0x60] sm:$0xff] %v796_v39 }
 0x1ca   : > { %v765_v16 = vpop.f32.mrf.mxu0 }
 0x1cb   : > { %813 = vst [vmem:[%s1894_s22 + $0x40] sm:$0xff] %v786_v30  ;;  %v766_v21 = vadd.f32 %v1196_v10, %v765_v16 }
 0x1cd   : > { %805 = vst [vmem:[%s1894_s22] sm:$0xff] %v766_v21 }
 0x1ce   : > { %v797_v31 = vpop.f32.mrf.mxu3 }
 0x1cf   : > { %v798_v45 = vadd.f32 %v1196_v10, %v797_v31 }
 0x1d0   : > { %v787_v32 = vpop.f32.mrf.mxu2 }
 0x1d1   : > { %v788_v9 = vadd.f32 %v1196_v10, %v787_v32  ;;  %818 = vst [vmem:[%s1894_s22 + $0x68] sm:$0xff] %v798_v45 }
 0x1d2   : > { %v767_v33 = vpop.f32.mrf.mxu0 }
 0x1d3   : > { %814 = vst [vmem:[%s1894_s22 + $0x48] sm:$0xff] %v788_v9  ;;  %v768_v34 = vadd.f32 %v1196_v10, %v767_v33  ;;  %v775_v37 = vpop.f32.mrf.mxu1 }
 0x1d4   : > { %v776_v42 = vadd.f32 %v1196_v10, %v775_v37 }
 0x1d5   : > { %806 = vst [vmem:[%s1894_s22 + $0x8] sm:$0xff] %v768_v34 }
 0x1d6   : > { %809 = vst [vmem:[%s1894_s22 + $0x20] sm:$0xff] %v776_v42 }
 0x1d8   : > { %v790_v43 = vpop.f32.mrf.mxu2 }
 0x1d9   : > { %v791_v44 = vadd.f32 %v1196_v10, %v790_v43 }
 0x1db   : > { %815 = vst [vmem:[%s1894_s22 + $0x50] sm:$0xff] %v791_v44  ;;  %v777_v46 = vpop.f32.mrf.mxu1 }
 0x1dc   : > { %v778_v53 = vadd.f32 %v1196_v10, %v777_v46 }
 0x1de   : > { %810 = vst [vmem:[%s1894_s22 + $0x28] sm:$0xff] %v778_v53 }
 0x1e0   : > { %v792_v55 = vpop.f32.mrf.mxu2  ;;  %v800_v58 = vpop.f32.mrf.mxu3 }
 0x1e1   : > { %v793_v63 = vadd.f32 %v1196_v10, %v792_v55  ;;  %v801_v51 = vadd.f32 %v1196_v10, %v800_v58 }
 0x1e3   : > { %816 = vst [vmem:[%s1894_s22 + $0x58] sm:$0xff] %v793_v63  ;;  %v780_v56 = vpop.f32.mrf.mxu1  ;;  %v770_v59 = vpop.f32.mrf.mxu0 }
 0x1e4   : > { %v781_v18 = vadd.f32 %v1196_v10, %v780_v56  ;;  %819 = vst [vmem:[%s1894_s22 + $0x70] sm:$0xff] %v801_v51  ;;  %v771_v57 = vadd.f32 %v1196_v10, %v770_v59 }
 0x1e6   : > { %811 = vst [vmem:[%s1894_s22 + $0x30] sm:$0xff] %v781_v18 }
 0x1e7   : > { %807 = vst [vmem:[%s1894_s22 + $0x10] sm:$0xff] %v771_v57 }
 0x1e8   : > { %v802_v60 = vpop.f32.mrf.mxu3 }
 0x1e9   : > { %v803_v52 = vadd.f32 %v1196_v10, %v802_v60 }
 0x1eb   : > { %v782_v61 = vpop.f32.mrf.mxu1  ;;  %820 = vst [vmem:[%s1894_s22 + $0x78] sm:$0xff] %v803_v52  ;;  %v772_v62 = vpop.f32.mrf.mxu0 }
 0x1ec   : > { %v783_v35 = vadd.f32 %v1196_v10, %v782_v61  ;;  %v773_v3 = vadd.f32 %v1196_v10, %v772_v62 }
 0x1ee   : > { %812 = vst [vmem:[%s1894_s22 + $0x38] sm:$0xff] %v783_v35 }
 0x1ef   : > { %808 = vst [vmem:[%s1894_s22 + $0x18] sm:$0xff] %v773_v3 }
 0x1f0   : > { %1318 = shalt.err (!%p1315_p0)
}
 0x1f1   : > { %s1385_s6 = smov 128   ;;  %s1386_s19 = smov 8  }
 0x1f2   : > { %1122 = dma.vmem_to_hbm [thread:$0]  (%p1486_p5), %s836_s25, 2048, %s838_s26, %s822_s15, %s1385_s6, %s1385_s6, %s1386_s19  }
 0x1f3 PF: > { %s852_s1 = sand.u32 1, %s1357_s12   ;;  %p1133_p3 = pnand %p950_p11, %p1456_p6 }
 0x1f4   : > { %s853_s20 = scalar_lea.sflag [#allocation5], %s852_s1 }
 0x1f5   : > { %p1134_p7 = pneg %p1133_p3 }
 0x1f7   : > { %1352 = dma.done.wait (%p1134_p7), %s853_s20, 2048  }
 0x1f8   : > { %1354 = vsyncadd (%p1134_p7), %s853_s20, 4294965248  ;;  %s20_s17 = sadd.s32 1, %s1377_s17   ;;  %s1976_s12 = smov %s1361_s13 }
 0x1f9   : > { %p17_p9 = scmp.ge.s32.totalorder %s20_s17, 4   ;;  %s1977_s13 = smov %s1365_s14 }
 0x1fa   : > { %s1978_s14 = smov %s1495_s18  ;;  %s1979_s15 = smov %s1373_s16 }
 0x1fb   : > { %s1980_s16 = smov %s1982_s5  ;;  %19 = sbr.rel (!%p17_p9) target bundleno = 9 (0x9), region = 89 }
 0x200   :  { %859 = vsyncpa [#allocation4], 1 }
 0x201   :  { %861 = vsyncpa [#allocation4 + $0x1], 1 }
 0x202   :  { %862 = vsyncpa [#allocation7], 1 }
 0x203   :  { %863 = vsyncpa [#allocation5], 1 }
 0x204   :  { %865 = vsyncpa [#allocation5 + $0x1], 1 }

</bundles_post_ra>
